<compile_context>
chip_gen: v5e
topology: v5e:2x2
jax: 0.10.0
libtpu: 0.0.40
codegen_flags: <defaults>
</compile_context>

<pallas_src>
import functools
import math

import jax
import jax.numpy as jnp
from jax import lax
from jax.experimental import pallas as pl
from jax.experimental.pallas import tpu as pltpu


def _round_up(x: int, m: int) -> int:
    return ((x + m - 1) // m) * m


def _embed_kernel(idx_ref, lut_ref, out_ref, *, scale, use_onehot):
    """One grid step == one block of `tb` tokens.

    idx_ref : VMEM (tb, 1)       int32 token ids for this block
    lut_ref : VMEM (vocab, Dp)   full embedding table, resident, single copy
    out_ref : VMEM (tb, Dp)      scaled embedding rows for this block
    """
    ids = idx_ref[...]                                   # (tb, 1) int32
    lut = lut_ref[...]                                   # (vocab, Dp)
    tb = out_ref.shape[0]
    vocab = lut_ref.shape[0]

    if use_onehot:
        # Gather as a dense MXU matmul: fully dense loads/stores, no scalar loop.
        iota = lax.broadcasted_iota(jnp.int32, (tb, vocab), 1)
        onehot = (iota == ids).astype(lut.dtype)          # (tb, vocab)
        rows = jnp.dot(
            onehot, lut,
            preferred_element_type=jnp.float32,
            precision=lax.Precision.HIGHEST,
        )                                                 # (tb, Dp) f32, exact
    else:
        # Vectorized gather for vocabularies too large for the one-hot matmul.
        rows = jnp.take(lut, ids[:, 0], axis=0).astype(jnp.float32)

    # Scale in f32, single dense multiply, then cast to the output dtype.
    out_ref[...] = (rows * scale).astype(out_ref.dtype)


def embeddings_forward(x, lut, *, tokens_per_block=256, onehot_vocab_limit=4096):
    """x: integer token ids (any shape); lut: (vocab, d_model) float table.

    Returns lut[x] * sqrt(d_model) with shape x.shape + (d_model,).
    """
    vocab, d_model = lut.shape
    orig_shape = x.shape
    out_dtype = lut.dtype
    scale = math.sqrt(float(d_model))

    idx = jnp.asarray(x, jnp.int32).reshape(-1)
    n = int(idx.shape[0])
    if n == 0:
        return jnp.zeros((*orig_shape, d_model), out_dtype)

    # Clamp ids: avoids silent OOB VMEM reads; matches jnp.take's clamping.
    idx = jnp.clip(idx, 0, vocab - 1)

    # Lane-dense output: pad d_model up to a multiple of 128.
    d_pad = _round_up(d_model, 128)
    if d_pad != d_model:
        lut = jnp.pad(lut, ((0, 0), (0, d_pad - d_model)))

    # Token block size: multiple of the dtype sublane packing (8/16/32 rows).
    sub = {4: 8, 2: 16, 1: 32}.get(jnp.dtype(out_dtype).itemsize, 8)
    tb = max(sub, min(int(tokens_per_block), _round_up(n, sub)))
    tb = _round_up(tb, sub)
    n_pad = _round_up(n, tb)
    n_blocks = n_pad // tb
    idx2d = jnp.pad(idx, (0, n_pad - n)).reshape(n_pad, 1)   # pad -> row 0 (valid)

    table_bytes = vocab * d_pad * jnp.dtype(lut.dtype).itemsize
    if table_bytes > 40 * 1024 * 1024:
        # TODO(synk): switch to an HBM row-gather path (pl.ANY + manual DMA)
        # for tables that do not fit VMEM (v7x has only 64 MiB per core).
        raise NotImplementedError(
            "embedding table too large for the VMEM-resident kernel")

    out_block_bytes = tb * d_pad * jnp.dtype(out_dtype).itemsize
    idx_block_bytes = tb * 128 * 4            # (tb, 1) int32 pads to 128 lanes
    vmem_limit = int(min(
        128 * 1024 * 1024,
        max(32 * 1024 * 1024,
            table_bytes + 2 * (out_block_bytes + idx_block_bytes) + (16 << 20)),
    ))

    use_onehot = vocab <= onehot_vocab_limit

    out = pl.pallas_call(
        functools.partial(_embed_kernel, scale=scale, use_onehot=use_onehot),
        out_shape=jax.ShapeDtypeStruct((n_pad, d_pad), out_dtype),
        grid=(n_blocks,),
        in_specs=[
            # Token ids for this block (lane dim 1 == full array dim).
            pl.BlockSpec((tb, 1), lambda i: (i, 0)),
            # Full table, unblocked & VMEM-resident -> single-buffered, no
            # per-step DMA.
            pl.BlockSpec(memory_space=pltpu.MemorySpace.VMEM),
        ],
        out_specs=pl.BlockSpec((tb, d_pad), lambda i: (i, 0)),
        compiler_params=pltpu.CompilerParams(
            dimension_semantics=("parallel",),
            vmem_limit_bytes=vmem_limit,
        ),
    )(idx2d, lut)

    return out[:n, :d_model].reshape(*orig_shape, d_model)


def _reference(x, lut):
    d_model = lut.shape[1]
    return jnp.take(lut, x, axis=0) * math.sqrt(float(d_model))


if __name__ == "__main__":
    B, S = 2, 8                  # batch, sequence (small, per the module spec)
    vocab, d_model = 32, 128     # d_model multiple of 128 -> lane-dense output

    key = jax.random.PRNGKey(0)
    k_idx, k_lut = jax.random.split(key)

    x = jax.random.randint(k_idx, (B, S), 0, vocab, dtype=jnp.int32)
    # torch nn.Embedding default init: N(0, 1)
    lut = jax.random.normal(k_lut, (vocab, d_model), dtype=jnp.float32)

    out = jax.block_until_ready(embeddings_forward(x, lut))
    ref = _reference(x, lut)
    assert out.shape == (B, S, d_model), out.shape
    assert jnp.allclose(out, ref, atol=1e-5, rtol=1e-5), "mismatch vs reference"

    # Second check: multi-block grid with padded trailing tokens.
    x2 = jax.random.randint(jax.random.PRNGKey(1), (3, 170), 0, vocab,
                            dtype=jnp.int32)
    out2 = jax.block_until_ready(embeddings_forward(x2, lut))
    ref2 = _reference(x2, lut)
    assert out2.shape == (3, 170, d_model), out2.shape
    assert jnp.allclose(out2, ref2, atol=1e-5, rtol=1e-5), "mismatch (multi-block)"

    print("KERNEL_OK")
</pallas_src>

<mosaic_0001>
module attributes {stable_mosaic.version = 11 : i64} {
  func.func @_embed_kernel(%arg0: i32, %arg1: memref<16x1xi32, #tpu.memory_space<vmem>>, %arg2: memref<32x128xf32, #tpu.memory_space<vmem>>, %arg3: memref<16x128xf32, #tpu.memory_space<vmem>>) attributes {dimension_semantics = [#tpu.dimension_semantics<parallel>], iteration_bounds = array<i64: 1>, scalar_prefetch = 0 : i64, scratch_operands = 0 : i64, tpu.core_type = #tpu.core_type<tc>, window_params = [{transform_indices = @transform_0, window_bounds = array<i64: 16, 1>}, {pipeline_mode = #tpu.pipeline_mode<synchronous>, transform_indices = @transform_1, window_bounds = array<i64: 32, 128>}, {transform_indices = @transform_2, window_bounds = array<i64: 16, 128>}]} {
    %c0 = arith.constant 0 : index
    %c0_0 = arith.constant 0 : index
    %0 = vector.load %arg1[%c0, %c0_0] : memref<16x1xi32, #tpu.memory_space<vmem>>, vector<16x1xi32>
    %c0_1 = arith.constant 0 : index
    %c0_2 = arith.constant 0 : index
    %1 = vector.load %arg2[%c0_1, %c0_2] : memref<32x128xf32, #tpu.memory_space<vmem>>, vector<32x128xf32>
    %2 = tpu.iota {dimensions = array<i32: 1>} : vector<16x32xi32>
    %3 = vector.broadcast %0 : vector<16x1xi32> to vector<16x32xi32>
    %4 = arith.cmpi eq, %2, %3 : vector<16x32xi32>
    %5 = arith.extui %4 : vector<16x32xi1> to vector<16x32xi32>
    %6 = arith.sitofp %5 : vector<16x32xi32> to vector<16x32xf32>
    %cst = arith.constant dense<0.000000e+00> : vector<16x128xf32>
    %7 = tpu.matmul %6, %1, %cst {dimension_numbers = #tpu.dot_dimension_numbers<[1], [0], [0], [1], [0, 0, 1, 1], [], []>, precision = #tpu.contract_precision<fp32>} : vector<16x32xf32>, vector<32x128xf32>, vector<16x128xf32> -> vector<16x128xf32>
    %cst_3 = arith.constant 11.3137083 : f32
    %8 = vector.broadcast %cst_3 : f32 to vector<16x128xf32>
    %9 = arith.mulf %7, %8 : vector<16x128xf32>
    %c0_4 = arith.constant 0 : index
    %c0_5 = arith.constant 0 : index
    %10 = vector.load %arg3[%c0_4, %c0_5] : memref<16x128xf32, #tpu.memory_space<vmem>>, vector<16x128xf32>
    tpu.vector_store %arg3[%c0_4, %c0_5], %9 {strides = array<i32>} : memref<16x128xf32, #tpu.memory_space<vmem>>, vector<16x128xf32>,
    return
  }
  func.func @transform_0(%arg0: i32) -> (i32, i32) {
    %c0_i32 = arith.constant 0 : i32
    %c0_i32_0 = arith.constant 0 : i32
    return %arg0, %c0_i32 : i32, i32
  }
  func.func @transform_1(%arg0: i32) -> (i32, i32) {
    %c0_i32 = arith.constant 0 : i32
    %c0_i32_0 = arith.constant 0 : i32
    %c0_i32_1 = arith.constant 0 : i32
    return %c0_i32, %c0_i32_0 : i32, i32
  }
  func.func @transform_2(%arg0: i32) -> (i32, i32) {
    %c0_i32 = arith.constant 0 : i32
    %c0_i32_0 = arith.constant 0 : i32
    return %arg0, %c0_i32 : i32, i32
  }
}

</mosaic_0001>

<bundles_post_ra>
// kernel: tpu_custom_call.1
= control target key start
LH: loop header
LB: loop body
LE: loop exit
PB: predicated region body
PF: predicated region fallthrough
CT: control target
= control target key end

     0   :  { %7 = vsyncpa [#allocation3], 0  ;;  %s416_s0 = inlined_call_operand.vmem [shape: s32[16,1], index: 0, kind: input, shape index: {}]   ;;  %s417_s1 = inlined_call_operand.hbm [shape: f32[32,128], index: 1, kind: input, shape index: {}]   ;;  %s418_s2 = inlined_call_operand.hbm [shape: f32[16,128], index: 2, kind: output, shape index: {}]  }
   0x1   :  { %8 = vsyncpa [#allocation4], 0  ;;  %s15_s11 = sshll.u32 %s417_s1, 4  ;;  %s369_s12 = smov [#allocation2]   ;;  %s16_s11 = int_to_ptr.hbm [resolvable:$true] %s15_s11 }
   0x2   :  { %s17_s13 = sshll.u32 %s369_s12, 4  ;;  %s370_s14 = smov 128   ;;  %s18_s13 = int_to_ptr.vmem [resolvable:$true] %s17_s13 }
   0x3   :  { %s371_s15 = smov 8  }
   0x4   :  { %23 = dma.hbm_to_vmem [thread:$0]  %s16_s11, 512, %s18_s13, [#allocation3], %s370_s14, %s370_s14, %s371_s15  }
   0x5   :  { %365 = dma.done.wait [#allocation3], 512  }
   0x6   :  { %366 = vsyncadd [#allocation3], 4294966784  ;;  %v372_v0 = vmov 0   ;;  %v29_v1 = vld [vmem:[%s416_s0 + $0x8] sm:$0xff]  ;;  %v33_v2 = vld [vmem:[#allocation2 + $0x18] sm:$0xff]  ;;  %v34_v27 = vlaneseq  ;;  %vm48_vm0 = vcmask 261120  }
   0x7   :  { %316 = vset.pattern.permute.xlu0 %v372_v0  ;;  %v67_v3 = vand.u32 4294901760, %v33_v2  ;;  %v32_v4 = vld [vmem:[#allocation2 + $0x10] sm:$0xff]  ;;  %v31_v5 = vld [vmem:[#allocation2 + $0x8] sm:$0xff]  ;;  %v28_v12 = vld [vmem:[%s416_s0] sm:$0xff]  ;;  %v373_v30 = vmov 0.0   ;;  %s374_s0 = smov [#allocation5]  }
   0x8   :  { %40 = vperm.xlu0 %316, %v29_v1   ;;  %v69_v6 = vand.u32 4294901760, %v32_v4  ;;  %v71_v7 = vand.u32 4294901760, %v31_v5  ;;  %v30_v21 = vld [vmem:[#allocation2] sm:$0xff]  ;;  %v35_v28 = vand.u32 127, %v34_v27  ;;  %s279_s19 = sshll.u32 %s374_s0, 4  ;;  %s281_s22 = sshll.u32 %s418_s2, 4  ;;  %s280_s19 = int_to_ptr.vmem [resolvable:$true] %s279_s19  ;;  %s282_s22 = int_to_ptr.hbm [resolvable:$true] %s281_s22 }
   0x9   :  { %v105_v8 = vsub.f32 %v33_v2, %v67_v3  ;;  %302 = vmatpush.msra.mxu2 %v67_v3  ;;  %68 = vmatpush.msra.mxu0 %v67_v3  ;;  %v73_v22 = vand.u32 4294901760, %v30_v21 }
   0xa   :  { %v111_v9 = vsub.f32 %v32_v4, %v69_v6  ;;  %v117_v10 = vsub.f32 %v31_v5, %v71_v7 }
   0xb   :  { %v106_v11 = vand.u32 4294901760, %v105_v8  ;;  %303 = vmatpush.msra.mxu2 %v69_v6  ;;  %70 = vmatpush.msra.mxu0 %v69_v6  ;;  %v123_v23 = vsub.f32 %v30_v21, %v73_v22 }
   0xc   :  { %v112_v13 = vand.u32 4294901760, %v111_v9  ;;  %v118_v14 = vand.u32 4294901760, %v117_v10 }
   0xd   :  { %v107_v15 = vsub.f32 %v105_v8, %v106_v11  ;;  %304 = vmatpush.msra.mxu2 %v71_v7  ;;  %72 = vmatpush.msra.mxu0 %v71_v7  ;;  %v124_v24 = vand.u32 4294901760, %v123_v23 }
   0xe   :  { %v113_v16 = vsub.f32 %v111_v9, %v112_v13  ;;  %v119_v17 = vsub.f32 %v117_v10, %v118_v14 }
   0xf   :  { %v108_v18 = vand.u32 4294901760, %v107_v15  ;;  %305 = vmatpush.msra.mxu2 %v73_v22  ;;  %74 = vmatpush.msra.mxu0 %v73_v22  ;;  %v125_v25 = vsub.f32 %v123_v23, %v124_v24 }
  0x10   :  { %37 = vperm.xlu0 %316, %v28_v12   ;;  %v114_v19 = vand.u32 4294901760, %v113_v16  ;;  %v120_v20 = vand.u32 4294901760, %v119_v17 }
  0x11   :  { %306 = vmatpush.msra.mxu3 %v108_v18  ;;  %109 = vmatpush.msra.mxu1 %v108_v18  ;;  %v126_v26 = vand.u32 4294901760, %v125_v25 }
  0x12   :  { %151 = vmatpush.msrb.mxu2 %v105_v8  ;;  %220 = vmatpush.msrb.mxu0 %v106_v11 }
  0x13   :  { %307 = vmatpush.msra.mxu3 %v114_v19  ;;  %115 = vmatpush.msra.mxu1 %v114_v19 }
  0x14   :  { %154 = vmatpush.msrb.mxu2 %v111_v9  ;;  %224 = vmatpush.msrb.mxu0 %v112_v13 }
  0x15   :  { %308 = vmatpush.msra.mxu3 %v120_v20  ;;  %121 = vmatpush.msra.mxu1 %v120_v20 }
  0x16   :  { %157 = vmatpush.msrb.mxu2 %v117_v10  ;;  %228 = vmatpush.msrb.mxu0 %v118_v14 }
  0x17   :  { %309 = vmatpush.msra.mxu3 %v126_v26  ;;  %127 = vmatpush.msra.mxu1 %v126_v26 }
  0x18   :  { %160 = vmatpush.msrb.mxu2 %v123_v23  ;;  %232 = vmatpush.msrb.mxu0 %v124_v24 }
  0x19   :  { %185 = vmatpush.msrb.mxu3 %v67_v3  ;;  %255 = vmatpush.msrb.mxu1 %v67_v3 }
  0x1b   :  { %187 = vmatpush.msrb.mxu3 %v69_v6  ;;  %257 = vmatpush.msrb.mxu1 %v69_v6 }
  0x1d   :  { %189 = vmatpush.msrb.mxu3 %v71_v7  ;;  %259 = vmatpush.msrb.mxu1 %v71_v7 }
  0x1f   :  { %191 = vmatpush.msrb.mxu3 %v73_v22  ;;  %261 = vmatpush.msrb.mxu1 %v73_v22 }
  0x7a   :  { %v41_v29 = vpop.permute.xlu0 %40 }
  0x7b   :  { %vm43_vm1 = vcmp.eq.s32.totalorder %v35_v28, %v41_v29 }
  0x7c   :  { %v295_v31 = vsel %vm43_vm1, 1.0, %v373_v30 }
  0x7d   :  { %v53_v32 = vsel %vm48_vm0, %v295_v31, 0  ;;  %297 = vmatmul.msk.f32.vlgmr.msra.gmra.mxu3 %vm48_vm0, %v295_v31 }
  0x7e   :  { %v84_v33 = vsub.f32 %v53_v32, %v53_v32 }
  0x80   :  { %v85_v34 = vand.u32 4294901760, %v84_v33 }
  0x82   :  { %v38_v35 = vpop.permute.xlu0 %37  ;;  %v86_v36 = vsub.f32 %v84_v33, %v85_v34 }
  0x83   :  { %vm42_vm2 = vcmp.eq.s32.totalorder %v35_v28, %v38_v35 }
  0x84   :  { %v294_v37 = vsel %vm42_vm2, 1.0, %v373_v30  ;;  %v87_v38 = vand.u32 4294901760, %v86_v36 }
  0x85   :  { %v50_v39 = vsel %vm48_vm0, %v294_v37, 0  ;;  %296 = vmatmul.msk.f32.vlgmr.msra.gmra.mxu1 %vm48_vm0, %v294_v37 }
  0x86   :  { %v76_v40 = vsub.f32 %v50_v39, %v50_v39  ;;  %88 = vmatmul.f32.vlgmr.msra.gmra.mxu2 %v87_v38 }
  0x88   :  { %v77_v41 = vand.u32 4294901760, %v76_v40 }
  0x8a   :  { %195 = vmatmul.f32.vlgmr.msrb.gmra.mxu3 %v77_v41  ;;  %v78_v42 = vsub.f32 %v76_v40, %v77_v41 }
  0x8c   :  { %v79_v43 = vand.u32 4294901760, %v78_v42 }
  0x8d   :  { %300 = vmatmul.msk.f32.vlgmr.msrb.gmra.mxu1 %vm48_vm0, %v294_v37 }
  0x8e   :  { %80 = vmatmul.f32.vlgmr.msra.gmra.mxu0 %v79_v43  ;;  %163 = vmatmul.f32.vlgmr.msrb.gmra.mxu2 %v76_v40 }
  0x92   :  { %201 = vmatmul.f32.gmra.mxu3 %v85_v34 }
  0x95   :  { %301 = vmatmul.msk.f32.gmra.mxu1 %vm48_vm0, %v295_v31 }
  0x96   :  { %168 = vmatmul.f32.gmra.mxu2 %v84_v33  ;;  %298 = vmatmul.msk.f32.vlgmr.msrb.gmra.mxu0 %vm48_vm0, %v294_v37 }
  0x9e   :  { %299 = vmatmul.msk.f32.gmra.mxu0 %vm48_vm0, %v295_v31 }
 0x100   :  { %v134_v44 = vpop.f32.mrf.mxu3 }
 0x102   :  { %v130_v46 = vpop.f32.mrf.mxu1 }
 0x109   :  { %v89_v45 = vpop.f32.mrf.mxu2 }
 0x10a   :  { %v264_v54 = vpop.f32.mrf.mxu1  ;;  %v135_v56 = vadd.f32 %v134_v44, %v89_v45 }
 0x10b   :  { %v81_v47 = vpop.f32.mrf.mxu0 }
 0x10c   :  { %v131_v48 = vadd.f32 %v130_v46, %v81_v47 }
 0x10d   :  { %v196_v49 = vpop.f32.mrf.mxu3 }
 0x111   :  { %v164_v50 = vpop.f32.mrf.mxu2 }
 0x112   :  { %v165_v51 = vadd.f32 %v164_v50, %v131_v48  ;;  %v268_v1 = vpop.f32.mrf.mxu1 }
 0x113   :  { %v235_v52 = vpop.f32.mrf.mxu0 }
 0x114   :  { %v197_v53 = vadd.f32 %v196_v49, %v165_v51 }
 0x115   :  { %v202_v61 = vpop.f32.mrf.mxu3 }
 0x116   :  { %v236_v55 = vadd.f32 %v235_v52, %v197_v53 }
 0x118   :  { %v265_v57 = vadd.f32 %v264_v54, %v236_v55 }
 0x119   :  { %v169_v58 = vpop.f32.mrf.mxu2 }
 0x11a   :  { %v271_v59 = vmul.f32 11.313708, %v265_v57  ;;  %v170_v60 = vadd.f32 %v169_v58, %v135_v56 }
 0x11b   :  { %v239_v63 = vpop.f32.mrf.mxu0 }
 0x11c   :  { %273 = vst [vmem:[#allocation5] sm:$0xff] %v271_v59  ;;  %v203_v62 = vadd.f32 %v202_v61, %v170_v60 }
 0x11e   :  { %v240_v0 = vadd.f32 %v239_v63, %v203_v62 }
 0x120   :  { %v269_v2 = vadd.f32 %v268_v1, %v240_v0 }
 0x122   :  { %v272_v3 = vmul.f32 11.313708, %v269_v2 }
 0x124   :  { %274 = vst [vmem:[#allocation5 + $0x8] sm:$0xff] %v272_v3 }
 0x125   :  { %287 = dma.vmem_to_hbm [thread:$0]  %s280_s19, 256, %s282_s22, [#allocation4], %s370_s14, %s370_s14, %s371_s15  }
 0x126   :  { %367 = dma.done.wait [#allocation4], 256  }
 0x127   :  { %368 = vsyncadd [#allocation4], 4294967040 }
 0x128   :  { %292 = vsyncpa [#allocation3], 1 }
 0x129   :  { %293 = vsyncpa [#allocation4], 1 }

</bundles_post_ra>
